<compile_context>
chip_gen: v5e
topology: v5e:2x2
jax: 0.10.0
libtpu: 0.0.40
codegen_flags: <defaults>
</compile_context>

<pallas_src>
import math

import jax
import jax.numpy as jnp
from jax import lax
from jax.experimental import pallas as pl
from jax.experimental.pallas import tpu as pltpu


# ---------------------------------------------------------------------------
# Kernel
# ---------------------------------------------------------------------------
def _sparse_linear_kernel(x_ref, w_ref, b_ref, o_ref):
    """One (tb, tn) output tile, accumulated directly in o_ref over the K axis.

    x_ref: (tb, tk) compute dtype      w_ref: (tn, tk) compute dtype
    b_ref: (1, tn)  f32                o_ref: (tb, tn) f32 (resident across K)
    """
    k = pl.program_id(2)

    @pl.when(k == 0)
    def _init():
        # Initialize the resident output tile with the broadcast bias.
        o_ref[...] = jnp.broadcast_to(b_ref[...], o_ref.shape).astype(o_ref.dtype)

    # Contract x's dim 1 with the weight tile's dim 1 (weight is stored (N, K)
    # as in PyTorch) -- MXU-native, no transpose materialized.
    o_ref[...] += lax.dot_general(
        x_ref[...], w_ref[...],
        dimension_numbers=(((1,), (1,)), ((), ())),
        preferred_element_type=jnp.float32)


# ---------------------------------------------------------------------------
# Tiling / VMEM helpers
# ---------------------------------------------------------------------------
def _largest_divisor_tile(dim, prefer, align):
    """Largest multiple of `align` that divides `dim`, <= prefer.

    Falls back to the full dim (always a legal Pallas block extent)."""
    if dim % align == 0:
        t = min(prefer, dim)
        t = max((t // align) * align, align)
        while t >= align:
            if dim % t == 0:
                return t
            t -= align
    return dim


def _vmem_cap_bytes():
    """Generation-aware cap for vmem_limit_bytes (conservative fallback)."""
    try:
        cap = int(pltpu.get_tpu_info().vmem_capacity_bytes)
        return max(int(cap * 3 // 4), 16 << 20)
    except Exception:
        return 48 << 20  # safe on v5e / v6e (128 MiB) and v7x (64 MiB)


# ---------------------------------------------------------------------------
# Wrappers
# ---------------------------------------------------------------------------
def prepare_sparse_linear_params(weight, mask, bias, *,
                                 compute_dtype=jnp.bfloat16):
    """Fold the static 0/1 sparsity mask into the weight ONCE (call at init).

    Returns (masked_weight[N,K] in compute_dtype, bias2d[1,N] f32)."""
    sw = (weight * mask).astype(compute_dtype)
    bias2d = bias.astype(jnp.float32).reshape(1, -1)
    return sw, bias2d


def sparse_linear_apply(x, masked_weight, bias2d, *, tb=512, tn=256, tk=1024):
    """y = x @ masked_weight.T + bias.   x: (B, K), masked_weight: (N, K)."""
    B, K = x.shape
    N, K2 = masked_weight.shape
    assert K == K2 and bias2d.shape == (1, N)

    compute_dtype = masked_weight.dtype
    xc = x.astype(compute_dtype)
    cbytes = jnp.dtype(compute_dtype).itemsize

    # Sublane-pack-aware batch-tile alignment (bf16 packs 2 rows / sublane).
    b_align = {1: 32, 2: 16}.get(cbytes, 8)

    tb = _largest_divisor_tile(B, tb, b_align)
    tk = _largest_divisor_tile(K, tk, 128)
    # Keep tn a multiple of 256 (full MXU result width); fall back to 128.
    tn_sel = _largest_divisor_tile(N, tn, 256)
    if tn_sel == N and N % 256 != 0:
        tn_sel = _largest_divisor_tile(N, tn, 128)
    tn = tn_sel
    assert B % tb == 0 and N % tn == 0 and K % tk == 0

    grid = (B // tb, N // tn, K // tk)

    # VMEM budget from the actual tile footprint: double-buffered x / w / bias
    # inputs + double-buffered resident f32 output tile, with headroom.
    est = (2 * (tb * tk * cbytes)      # x tiles
           + 2 * (tn * tk * cbytes)    # weight tiles
           + 2 * (tn * 4)              # bias tiles
           + 2 * (tb * tn * 4))        # output/accumulator tiles
    vmem_limit = int(min(max(int(est * 1.5), 8 << 20), _vmem_cap_bytes()))

    return pl.pallas_call(
        _sparse_linear_kernel,
        out_shape=jax.ShapeDtypeStruct((B, N), jnp.float32),
        grid_spec=pltpu.PrefetchScalarGridSpec(
            num_scalar_prefetch=0,
            grid=grid,
            in_specs=[
                pl.BlockSpec((tb, tk), lambda bi, j, k: (bi, k)),   # x tile
                pl.BlockSpec((tn, tk), lambda bi, j, k: (j, k)),    # masked W
                pl.BlockSpec((1, tn), lambda bi, j, k: (0, j)),     # bias tile
            ],
            # index_map ignores k -> output tile resident across the K axis.
            out_specs=pl.BlockSpec((tb, tn), lambda bi, j, k: (bi, j)),
        ),
        compiler_params=pltpu.CompilerParams(
            dimension_semantics=("parallel", "parallel", "arbitrary"),
            vmem_limit_bytes=vmem_limit),
    )(xc, masked_weight, bias2d)


def sparse_linear(x, weight, mask, bias, *, tb=512, tn=256, tk=1024,
                  compute_dtype=jnp.bfloat16):
    """Convenience wrapper matching the PyTorch forward exactly.

    NOTE: this re-does weight*mask + cast on every call; for repeated forward
    passes call `prepare_sparse_linear_params` once and reuse the result with
    `sparse_linear_apply`.
    """
    sw, bias2d = prepare_sparse_linear_params(
        weight, mask, bias, compute_dtype=compute_dtype)
    return sparse_linear_apply(x, sw, bias2d, tb=tb, tn=tn, tk=tk)


# ---------------------------------------------------------------------------
# Parameter init matching SparseLinear.__init__
# ---------------------------------------------------------------------------
def init_sparse_linear_params(key, in_features, out_features, sparsity=0.9):
    """Deterministic re-implementation of SparseLinear parameter setup."""
    k_w, k_b, k_m = jax.random.split(key, 3)

    # nn.init.kaiming_uniform_(weight, a=sqrt(5)) -> U(-1/sqrt(fan_in), 1/sqrt(fan_in))
    fan_in = in_features
    w_bound = 1.0 / math.sqrt(fan_in)
    weight = jax.random.uniform(
        k_w, (out_features, in_features), jnp.float32, -w_bound, w_bound)

    # bias ~ U(-1/sqrt(fan_in), 1/sqrt(fan_in))
    b_bound = 1.0 / math.sqrt(fan_in)
    bias = jax.random.uniform(k_b, (out_features,), jnp.float32, -b_bound, b_bound)

    # mask: rand_like(weight) > quantile(rand, sparsity)
    rand = jax.random.uniform(k_m, (out_features, in_features), jnp.float32)
    threshold = jnp.quantile(rand, sparsity)
    mask = (rand > threshold).astype(jnp.float32)

    return weight, mask, bias


if __name__ == "__main__":
    key = jax.random.PRNGKey(0)
    k_params, k_x = jax.random.split(key)

    batch = 8
    in_features = 32
    out_features = 256
    sparsity = 0.9

    weight, mask, bias = init_sparse_linear_params(
        k_params, in_features, out_features, sparsity=sparsity)
    x = jax.random.normal(k_x, (batch, in_features), jnp.float32)

    # Reference (plain JAX): F.linear(x, weight*mask, bias)
    y_ref = x @ (weight * mask).T + bias

    # Preferred path: prepare params once (bf16 weight stream), then apply.
    sw_bf16, bias2d = prepare_sparse_linear_params(
        weight, mask, bias, compute_dtype=jnp.bfloat16)
    y = sparse_linear_apply(x, sw_bf16, bias2d)
    y = jax.block_until_ready(y)
    assert y.shape == (batch, out_features)
    assert jnp.allclose(y, y_ref, atol=5e-2, rtol=5e-2)

    # f32 compute path: exact match to the reference.
    sw_f32, bias2d_f32 = prepare_sparse_linear_params(
        weight, mask, bias, compute_dtype=jnp.float32)
    y32 = sparse_linear_apply(x, sw_f32, bias2d_f32)
    y32 = jax.block_until_ready(y32)
    assert jnp.allclose(y32, y_ref, atol=1e-5, rtol=1e-5)

    # Convenience wrapper (same signature / semantics as the PyTorch forward).
    y_conv = jax.block_until_ready(sparse_linear(x, weight, mask, bias))
    assert jnp.allclose(y_conv, y_ref, atol=5e-2, rtol=5e-2)

    print("KERNEL_OK")
</pallas_src>

<mosaic_0001>
module attributes {stable_mosaic.version = 11 : i64} {
  func.func @_sparse_linear_kernel(%arg0: i32, %arg1: i32, %arg2: i32, %arg3: memref<8x32xbf16, #tpu.memory_space<vmem>>, %arg4: memref<256x32xbf16, #tpu.memory_space<vmem>>, %arg5: memref<1x256xf32, #tpu.memory_space<vmem>>, %arg6: memref<8x256xf32, #tpu.memory_space<vmem>>) attributes {dimension_semantics = [#tpu.dimension_semantics<parallel>, #tpu.dimension_semantics<parallel>, #tpu.dimension_semantics<arbitrary>], iteration_bounds = array<i64: 1, 1, 1>, scalar_prefetch = 0 : i64, scratch_operands = 0 : i64, tpu.core_type = #tpu.core_type<tc>, window_params = [{transform_indices = @transform_0, window_bounds = array<i64: 8, 32>}, {transform_indices = @transform_1, window_bounds = array<i64: 256, 32>}, {transform_indices = @transform_2, window_bounds = array<i64: 1, 256>}, {transform_indices = @transform_3, window_bounds = array<i64: 8, 256>}]} {
    %c0_i32 = arith.constant 0 : i32
    %0 = arith.cmpi eq, %arg2, %c0_i32 : i32
    %1 = arith.extui %0 : i1 to i32
    %c0_i32_0 = arith.constant 0 : i32
    %2 = arith.cmpi ne, %1, %c0_i32_0 : i32
    scf.if %2 {
      %c0_8 = arith.constant 0 : index
      %c0_9 = arith.constant 0 : index
      %9 = vector.load %arg5[%c0_8, %c0_9] : memref<1x256xf32, #tpu.memory_space<vmem>>, vector<1x256xf32>
      %10 = vector.shape_cast %9 : vector<1x256xf32> to vector<1x256xf32>
      %11 = vector.broadcast %10 : vector<1x256xf32> to vector<8x256xf32>
      %c0_10 = arith.constant 0 : index
      %c0_11 = arith.constant 0 : index
      %12 = vector.load %arg6[%c0_10, %c0_11] : memref<8x256xf32, #tpu.memory_space<vmem>>, vector<8x256xf32>
      tpu.vector_store %arg6[%c0_10, %c0_11], %11 {strides = array<i32>} : memref<8x256xf32, #tpu.memory_space<vmem>>, vector<8x256xf32>,
    } else {
    }
    %c0 = arith.constant 0 : index
    %c0_1 = arith.constant 0 : index
    %3 = vector.load %arg6[%c0, %c0_1] : memref<8x256xf32, #tpu.memory_space<vmem>>, vector<8x256xf32>
    %c0_2 = arith.constant 0 : index
    %c0_3 = arith.constant 0 : index
    %4 = vector.load %arg3[%c0_2, %c0_3] : memref<8x32xbf16, #tpu.memory_space<vmem>>, vector<8x32xbf16>
    %c0_4 = arith.constant 0 : index
    %c0_5 = arith.constant 0 : index
    %5 = vector.load %arg4[%c0_4, %c0_5] : memref<256x32xbf16, #tpu.memory_space<vmem>>, vector<256x32xbf16>
    %cst = arith.constant dense<0.000000e+00> : vector<8x256xf32>
    %6 = tpu.matmul %4, %5, %cst {dimension_numbers = #tpu.dot_dimension_numbers<[1], [1], [0], [0], [0, 0, 1, 0], [], []>} : vector<8x32xbf16>, vector<256x32xbf16>, vector<8x256xf32> -> vector<8x256xf32>
    %7 = arith.addf %3, %6 : vector<8x256xf32>
    %c0_6 = arith.constant 0 : index
    %c0_7 = arith.constant 0 : index
    %8 = vector.load %arg6[%c0_6, %c0_7] : memref<8x256xf32, #tpu.memory_space<vmem>>, vector<8x256xf32>
    tpu.vector_store %arg6[%c0_6, %c0_7], %7 {strides = array<i32>} : memref<8x256xf32, #tpu.memory_space<vmem>>, vector<8x256xf32>,
    return
  }
  func.func @transform_0(%arg0: i32, %arg1: i32, %arg2: i32) -> (i32, i32) {
    %c0_i32 = arith.constant 0 : i32
    return %arg0, %arg2 : i32, i32
  }
  func.func @transform_1(%arg0: i32, %arg1: i32, %arg2: i32) -> (i32, i32) {
    %c0_i32 = arith.constant 0 : i32
    return %arg1, %arg2 : i32, i32
  }
  func.func @transform_2(%arg0: i32, %arg1: i32, %arg2: i32) -> (i32, i32) {
    %c0_i32 = arith.constant 0 : i32
    %c0_i32_0 = arith.constant 0 : i32
    return %c0_i32, %arg1 : i32, i32
  }
  func.func @transform_3(%arg0: i32, %arg1: i32, %arg2: i32) -> (i32, i32) {
    %c0_i32 = arith.constant 0 : i32
    return %arg0, %arg1 : i32, i32
  }
}

</mosaic_0001>

<bundles_post_ra>
// kernel: tpu_custom_call.1
= control target key start
LH: loop header
LB: loop body
LE: loop exit
PB: predicated region body
PF: predicated region fallthrough
CT: control target
= control target key end

     0   :  { %vm142_vm0 = vcmask 261120   ;;  %s445_s0 = inlined_call_operand.vmem [shape: bf16[8,32], index: 0, kind: input, shape index: {}]   ;;  %s446_s1 = inlined_call_operand.vmem [shape: bf16[256,32], index: 1, kind: input, shape index: {}]   ;;  %s447_s2 = inlined_call_operand.vmem [shape: f32[1,256], index: 2, kind: input, shape index: {}]   ;;  %s448_s3 = inlined_call_operand.hbm [shape: f32[8,256], index: 3, kind: output, shape index: {}]  }
   0x1   :  { %v313_v0 = vld [vmem:[%s446_s1 + $0x38] sm:$0xff]  ;;  %v312_v4 = vld [vmem:[%s446_s1 + $0x30] sm:$0xff] }
   0x2   :  { %v321_v1 = vld [vmem:[%s446_s1 + $0x78] sm:$0xff]  ;;  %v168_v2 = vsel %vm142_vm0, %v313_v0, 0  ;;  %v320_v5 = vld [vmem:[%s446_s1 + $0x70] sm:$0xff] }
   0x3   :  { %v192_v3 = vsel %vm142_vm0, %v321_v1, 0  ;;  %194 = vmatpush.bf16.xpose.msra.mxu0 %v168_v2 }
   0x4   :  { %207 = vmatpush.bf16.xpose.msra.mxu1 %v192_v3 }
   0x5   :  { %8 = vsyncpa [#allocation3], 0  ;;  %v165_v6 = vsel %vm142_vm0, %v312_v4, 0  ;;  %v189_v7 = vsel %vm142_vm0, %v320_v5, 0  ;;  %v311_v8 = vld [vmem:[%s446_s1 + $0x28] sm:$0xff]  ;;  %v310_v12 = vld [vmem:[%s446_s1 + $0x20] sm:$0xff] }
   0x6   :  { %v319_v9 = vld [vmem:[%s446_s1 + $0x68] sm:$0xff]  ;;  %v162_v10 = vsel %vm142_vm0, %v311_v8, 0  ;;  %v318_v13 = vld [vmem:[%s446_s1 + $0x60] sm:$0xff]  ;;  %v159_v14 = vsel %vm142_vm0, %v310_v12, 0  ;;  %v309_v16 = vld [vmem:[%s446_s1 + $0x18] sm:$0xff]  ;;  %s231_s24 = sshll.u32 %s448_s3, 4  ;;  %s232_s24 = int_to_ptr.hbm [resolvable:$true] %s231_s24 }
   0x7   :  { %v186_v11 = vsel %vm142_vm0, %v319_v9, 0  ;;  %v183_v15 = vsel %vm142_vm0, %v318_v13, 0  ;;  %v317_v17 = vld [vmem:[%s446_s1 + $0x58] sm:$0xff]  ;;  %v156_v18 = vsel %vm142_vm0, %v309_v16, 0  ;;  %v308_v20 = vld [vmem:[%s446_s1 + $0x10] sm:$0xff]  ;;  %v307_v24 = vld [vmem:[%s446_s1 + $0x8] sm:$0xff] }
   0x8   :  { %v180_v19 = vsel %vm142_vm0, %v317_v17, 0  ;;  %v316_v21 = vld [vmem:[%s446_s1 + $0x50] sm:$0xff]  ;;  %v153_v22 = vsel %vm142_vm0, %v308_v20, 0  ;;  %v315_v25 = vld [vmem:[%s446_s1 + $0x48] sm:$0xff]  ;;  %v150_v26 = vsel %vm142_vm0, %v307_v24, 0  ;;  %v306_v28 = vld [vmem:[%s446_s1] sm:$0xff] }
   0x9   :  { %v177_v23 = vsel %vm142_vm0, %v316_v21, 0  ;;  %v174_v27 = vsel %vm142_vm0, %v315_v25, 0  ;;  %v314_v29 = vld [vmem:[%s446_s1 + $0x40] sm:$0xff]  ;;  %v147_v30 = vsel %vm142_vm0, %v306_v28, 0  ;;  %s349_s1 = smov [#allocation2]  }
   0xa   :  { %v171_v31 = vsel %vm142_vm0, %v314_v29, 0  ;;  %v29_v32 = vld [vmem:[%s445_s0] sm:$0xf]  ;;  %s229_s21 = sshll.u32 %s349_s1, 4  ;;  %s230_s21 = int_to_ptr.vmem [resolvable:$true] %s229_s21 }
   0xb   :  { %195 = vmatpush.bf16.xpose.msra.mxu0 %v165_v6  ;;  %v19_v33 = vld [vmem:[%s447_s2] sm:$0x3] }
   0xc   :  { %208 = vmatpush.bf16.xpose.msra.mxu1 %v189_v7  ;;  %v21_v34 = vperm.slane %v19_v33, 0  ;;  %v22_v35 = vperm.slane %v19_v33, 1 }
  0x13   :  { %196 = vmatpush.bf16.xpose.msra.mxu0 %v162_v10 }
  0x14   :  { %209 = vmatpush.bf16.xpose.msra.mxu1 %v186_v11 }
  0x1b   :  { %197 = vmatpush.bf16.xpose.msra.mxu0 %v159_v14 }
  0x1c   :  { %210 = vmatpush.bf16.xpose.msra.mxu1 %v183_v15 }
  0x23   :  { %198 = vmatpush.bf16.xpose.msra.mxu0 %v156_v18 }
  0x24   :  { %211 = vmatpush.bf16.xpose.msra.mxu1 %v180_v19 }
  0x2b   :  { %199 = vmatpush.bf16.xpose.msra.mxu0 %v153_v22 }
  0x2c   :  { %212 = vmatpush.bf16.xpose.msra.mxu1 %v177_v23 }
  0x33   :  { %200 = vmatpush.bf16.xpose.msra.mxu0 %v150_v26 }
  0x34   :  { %213 = vmatpush.bf16.xpose.msra.mxu1 %v174_v27 }
  0x3b   :  { %201 = vmatpush.bf16.xpose.msra.mxu0 %v147_v30 }
  0x3c   :  { %214 = vmatpush.bf16.xpose.msra.mxu1 %v171_v31 }
  0x42   :  { %304 = vmatmul.msk.bf16.vlgmr.msra.gmra.mxu0 %vm142_vm0, %v29_v32 }
  0x43   :  { %305 = vmatmul.msk.bf16.vlgmr.msra.gmra.mxu1 %vm142_vm0, %v29_v32 }
  0xbf   :  { %v203_v36 = vpop.f32.mrf.mxu0 }
  0xc0   :  { %v216_v37 = vpop.f32.mrf.mxu1  ;;  %v220_v38 = vadd.f32 %v203_v36, %v21_v34 }
  0xc1   :  { %v221_v39 = vadd.f32 %v216_v37, %v22_v35 }
  0xc2   :  { %222 = vst [vmem:[#allocation2] sm:$0xff] %v220_v38 }
  0xc3   :  { %223 = vst [vmem:[#allocation2 + $0x8] sm:$0xff] %v221_v39 }
  0xc4   :  { %234 = dma.vmem_to_hbm [thread:$0]  %s230_s21, 256, %s232_s24, [#allocation3]  }
  0xc7   :  { %v205_v40 = vpop.f32.mrf.mxu0 }
  0xc8   :  { %v218_v41 = vpop.f32.mrf.mxu1 }
  0xc9   :  { %347 = dma.done.wait [#allocation3], 256  }
  0xca   :  { %348 = vsyncadd [#allocation3], 4294967040 }
  0xcb   :  { %239 = vsyncpa [#allocation3], 1 }

</bundles_post_ra>
